<compile_context>
chip_gen: v7x
topology: tpu7x:2x2x1
jax: 0.10.0
libtpu: 0.0.40
codegen_flags: <defaults>
</compile_context>

<pallas_src>
import numpy as np
import jax
import jax.numpy as jnp
from jax import lax
from jax.experimental import pallas as pl
from jax.experimental.pallas import tpu as pltpu

# ----------------------- synthetic (BERT-like) config -----------------------
HIDDEN = 32
INTERMEDIATE = 64
NUM_HEADS = 4
HEAD_DIM = HIDDEN // NUM_HEADS
SCALING = HEAD_DIM ** (-0.5)
NUM_LABELS = 11
LABEL_NUM = NUM_LABELS - 3          # = 8 graph nodes
VOCAB = 30                          # original_embedding.num_embeddings
PAD_TOKEN_ID = 0
LN_EPS = 1e-5
LABEL_TOK_LEN = 4
NEW_EMB_ROWS = LABEL_NUM + 1        # rows of the `new_embedding` ctor argument
EMB_SIZE = VOCAB + NEW_EMB_ROWS     # = 39 rows of the fused embedding table


# ------------------------ graphormer hierarchy tables -----------------------
def build_graph_tables(label_num):
    """Replicates GraphEncoder.__init__ (graphormer branch) table construction."""
    parent = [0] + [(i - 1) // 2 for i in range(1, label_num)]   # synthetic tree
    inverse_label_list = {}

    def get_root(n):
        ret = []
        while parent[n] != n:
            ret.append(n)
            n = parent[n]
        ret.append(n)
        return ret

    for i in range(label_num):
        inverse_label_list[i] = get_root(i)

    node_list = {}

    def get_distance(n1, n2):
        p = q = 0
        node_list[(n1, n2)] = a = []
        l1, l2 = inverse_label_list[n1], inverse_label_list[n2]
        while p < len(l1) and q < len(l2):
            if l1[p] > l2[q]:
                a.append(l1[p]); p += 1
            elif l1[p] < l2[q]:
                a.append(l2[q]); q += 1
            else:
                break
        return p + q

    dist = np.zeros((label_num, label_num), dtype=np.int32)
    for i in range(label_num):
        for j in range(label_num):
            dist[i, j] = get_distance(j, i)        # matches torch Tensor.map_ order
    edge = np.zeros((label_num, label_num, 15), dtype=np.int32)
    for i in range(label_num):
        for j in range(label_num):
            a = node_list[(i, j)]
            if a:
                edge[i, j, :len(a)] = np.asarray(a, dtype=np.int32)
    return (jnp.asarray(dist.reshape(1, -1)),            # distance_mat (1, L*L)
            jnp.asarray(edge.reshape(-1, 15)))           # edge_mat (L*L, 15)


# ------------------------------ parameter init -------------------------------
def init_params(key):
    ks = jax.random.split(key, 24)
    n = lambda k, shape: (jax.random.normal(k, shape, jnp.float32) * 0.02)
    p = {
        'orig_emb':    n(ks[0], (VOCAB, HIDDEN)),
        'new_emb_arg': n(ks[1], (NEW_EMB_ROWS, HIDDEN)),
        # graphormer embeddings (padding_idx = 0 rows zeroed)
        'id_emb':   n(ks[2], (LABEL_NUM, HIDDEN)).at[0].set(0.0),
        'dist_emb': n(ks[3], (20, 1)).at[0].set(0.0),
        'edge_emb': n(ks[4], (LABEL_NUM, 1)).at[0].set(0.0),
        # GraphAttention
        'wq': n(ks[5], (HIDDEN, HIDDEN)), 'bq': n(ks[6], (HIDDEN,)),
        'wk': n(ks[7], (HIDDEN, HIDDEN)), 'bk': n(ks[8], (HIDDEN,)),
        'wv': n(ks[9], (HIDDEN, HIDDEN)), 'bv': n(ks[10], (HIDDEN,)),
        'wo': n(ks[11], (HIDDEN, HIDDEN)), 'bo': n(ks[12], (HIDDEN,)),
        # GraphLayer FFN + LayerNorms
        'ln1_g': jnp.ones((HIDDEN,), jnp.float32), 'ln1_b': jnp.zeros((HIDDEN,), jnp.float32),
        'fc1_w': n(ks[13], (INTERMEDIATE, HIDDEN)), 'fc1_b': n(ks[14], (INTERMEDIATE,)),
        'fc2_w': n(ks[15], (HIDDEN, INTERMEDIATE)), 'fc2_b': n(ks[16], (HIDDEN,)),
        'ln2_g': jnp.ones((HIDDEN,), jnp.float32), 'ln2_b': jnp.zeros((HIDDEN,), jnp.float32),
    }
    # synthetic tokenized label names (>=1 non-pad token per row)
    label_name = jax.random.randint(ks[17], (LABEL_NUM, LABEL_TOK_LEN), 1, VOCAB,
                                    dtype=jnp.int32)
    label_name = label_name.at[::2, -1].set(PAD_TOKEN_ID)
    return p, label_name


# ------------------------------ shared math ----------------------------------
def _gelu_new(x):
    # ACT2FN['gelu_new'] (tanh approximation) -> EUP tanh
    return 0.5 * x * (1.0 + jnp.tanh(0.7978845608028654 * (x + 0.044715 * x * x * x)))


def _layer_norm(x, g, b):
    mu = jnp.mean(x, axis=-1, keepdims=True)
    var = jnp.mean((x - mu) * (x - mu), axis=-1, keepdims=True)
    return (x - mu) * lax.rsqrt(var + LN_EPS) * g + b


# ------------------------------ fused Pallas kernel ---------------------------
def fused_graph_embedding_kernel(x_ref, ea_ref, wqkv_ref, wslab_ref, wfc2_ref,
                                 vecs_ref, emb_ref, idx_ref, out_ref):
    """GraphLayer (graphormer) + F.embedding gather, fully fused, single tile.

    Packed inputs:
      x_ref    (L, H)        label embeddings (graph encoder preprocessing done in JAX)
      ea_ref   (L, H)        extra_attn bias pre-tiled across the NUM_HEADS lane blocks
      wqkv_ref (H, 3H)       [wq.T * scaling | wk.T | wv.T]
      wslab_ref(H, H+I+H)    [wo.T | fc1.T | head block-diag mask]  (lane-dense 128)
      wfc2_ref (I, H)
      vecs_ref (8, 3H)       row0 qkv bias (q pre-scaled), 1 bo, 2 fc1_b, 3 fc2_b,
                             4..7 ln1_g, ln1_b, ln2_g, ln2_b (each padded to 3H lanes)
      emb_ref  (VOCAB+1, H)  [original_embedding ; new_embedding[-1]]
      idx_ref  (T, 1) int32  flattened token ids into the fused EMB_SIZE-row table
    """
    x = x_ref[...]                              # (L, H)
    vecs = vecs_ref[...]                        # (8, 3H)
    wslab = wslab_ref[...]                      # (H, 128)
    w_o = wslab[:, :HIDDEN]
    w_fc1 = wslab[:, HIDDEN:HIDDEN + INTERMEDIATE]
    bd = wslab[:, HIDDEN + INTERMEDIATE:]       # (H, H) 0/1 head block-diagonal mask

    # ---- fused Q/K/V projection: one MXU op (scaling folded into wq/bq) ----
    qkv = jnp.dot(x, wqkv_ref[...], preferred_element_type=jnp.float32) + vecs[0:1, :]
    q = qkv[:, 0:HIDDEN]
    k = qkv[:, HIDDEN:2 * HIDDEN]
    v = qkv[:, 2 * HIDDEN:3 * HIDDEN]

    # ---- all heads at once via block-diagonal K / V packs ----
    k_bd = jnp.concatenate([k] * NUM_HEADS, axis=0) * bd    # (H, H)
    v_bd = jnp.concatenate([v] * NUM_HEADS, axis=0) * bd    # (H, H)

    # logits[n, h*D+m] = <q_h[n], k_h[m]> + extra_attn[n, m]
    logits = jnp.dot(q, k_bd.T, preferred_element_type=jnp.float32) + ea_ref[...]
    # per-8-lane-segment softmax; a global row max is a valid constant shift,
    # and the block-diag matmul only sums within each head's own lane segment.
    p = jnp.exp(logits - jnp.max(logits, axis=-1, keepdims=True))
    denom = jnp.dot(p, bd, preferred_element_type=jnp.float32)   # segment sums, broadcast
    probs = p * pl.reciprocal(denom, approx=True)
    attn = jnp.dot(probs, v_bd, preferred_element_type=jnp.float32)  # heads already concat

    attn = jnp.dot(attn, w_o, preferred_element_type=jnp.float32) + vecs[1:2, :HIDDEN]

    h1 = _layer_norm(x + attn, vecs[4:5, :HIDDEN], vecs[5:6, :HIDDEN])
    ff = _gelu_new(jnp.dot(h1, w_fc1, preferred_element_type=jnp.float32)
                   + vecs[2:3, :INTERMEDIATE])
    ff = jnp.dot(ff, wfc2_ref[...], preferred_element_type=jnp.float32) + vecs[3:4, :HIDDEN]
    graph_out = _layer_norm(h1 + ff, vecs[6:7, :HIDDEN], vecs[7:8, :HIDDEN])  # (L, H)

    # ---- F.embedding gather fused in: exact one-hot f32 MXU matmuls ----
    idx = idx_ref[...]                          # (T, 1) int32
    n_tok = idx.shape[0]
    last = EMB_SIZE - 1                         # fused-table row of new_embedding[-1]

    iota_a = lax.broadcasted_iota(jnp.int32, (n_tok, VOCAB + 1), 1)
    idx_a = jnp.where(idx == last, VOCAB, idx)  # map the tail row onto emb_ref row 30
    sel_a = ((idx < VOCAB) | (idx == last)).astype(jnp.float32)
    oh_a = (iota_a == idx_a).astype(jnp.float32) * sel_a            # (T, VOCAB+1)

    iota_b = lax.broadcasted_iota(jnp.int32, (n_tok, LABEL_NUM), 1)
    sel_b = ((idx >= VOCAB) & (idx < last)).astype(jnp.float32)
    oh_b = (iota_b == (idx - VOCAB)).astype(jnp.float32) * sel_b    # (T, L)

    out = (jnp.dot(oh_a, emb_ref[...], preferred_element_type=jnp.float32)
           + jnp.dot(oh_b, graph_out, preferred_element_type=jnp.float32))
    out_ref[...] = out.astype(out_ref.dtype)


def fused_forward_pallas(x_tok, label_emb, extra_attn, p, new_emb_last):
    """Pack params into a handful of lane-dense slabs and run the fused kernel."""
    n_tok = int(np.prod(x_tok.shape))
    idx = x_tok.reshape(n_tok, 1).astype(jnp.int32)
    W = 3 * HIDDEN

    # (H, 3H) = [wq.T * scaling | wk.T | wv.T]
    wqkv = jnp.concatenate([p['wq'].T * SCALING, p['wk'].T, p['wv'].T], axis=1)
    # head block-diagonal mask, packed with wo / fc1 into a lane-dense (H, 128) slab
    blk = jnp.arange(HIDDEN) // HEAD_DIM
    bd = (blk[:, None] == blk[None, :]).astype(jnp.float32)
    wslab = jnp.concatenate([p['wo'].T, p['fc1_w'].T, bd], axis=1)   # (H, H+I+H)=(32,128)
    wfc2 = p['fc2_w'].T                                              # (I, H)

    pad = lambda a: jnp.pad(a, (0, W - a.shape[0]))
    vecs = jnp.stack([
        jnp.concatenate([p['bq'] * SCALING, p['bk'], p['bv']]),      # (3H,)
        pad(p['bo']), pad(p['fc1_b']), pad(p['fc2_b']),
        pad(p['ln1_g']), pad(p['ln1_b']), pad(p['ln2_g']), pad(p['ln2_b'])], axis=0)

    emb_ext = jnp.concatenate([p['orig_emb'], new_emb_last], axis=0)  # (VOCAB+1, H)
    ea_t = jnp.tile(extra_attn.astype(jnp.float32), (1, NUM_HEADS))   # (L, H)

    vmem = lambda: pl.BlockSpec(memory_space=pltpu.MemorySpace.VMEM)
    args = (label_emb.astype(jnp.float32), ea_t, wqkv, wslab, wfc2, vecs, emb_ext, idx)
    out = pl.pallas_call(
        fused_graph_embedding_kernel,
        out_shape=jax.ShapeDtypeStruct((n_tok, HIDDEN), jnp.float32),
        in_specs=[vmem() for _ in args],
        out_specs=vmem(),
    )(*args)
    return out.reshape(x_tok.shape + (HIDDEN,))


# --------------------------- pure-JAX reference path -------------------------
def graph_layer_ref(label_emb, extra_attn, p):
    x = label_emb
    q = (x @ p['wq'].T + p['bq']) * SCALING
    k = x @ p['wk'].T + p['bk']
    v = x @ p['wv'].T + p['bv']
    N = x.shape[0]
    qh = q.reshape(N, NUM_HEADS, HEAD_DIM).transpose(1, 0, 2)
    kh = k.reshape(N, NUM_HEADS, HEAD_DIM).transpose(1, 0, 2)
    vh = v.reshape(N, NUM_HEADS, HEAD_DIM).transpose(1, 0, 2)
    logits = jnp.einsum('hnd,hmd->hnm', qh, kh) + extra_attn[None]
    probs = jax.nn.softmax(logits, axis=-1)
    o = jnp.einsum('hnm,hmd->hnd', probs, vh).transpose(1, 0, 2).reshape(N, HIDDEN)
    attn = o @ p['wo'].T + p['bo']
    h1 = _layer_norm(x + attn, p['ln1_g'], p['ln1_b'])
    ff = _gelu_new(h1 @ p['fc1_w'].T + p['fc1_b'])
    ff = ff @ p['fc2_w'].T + p['fc2_b']
    return _layer_norm(h1 + ff, p['ln2_g'], p['ln2_b'])


# ------------------------------ full forward ---------------------------------
def graph_embedding_forward(x, p, label_name, distance_mat, edge_mat, use_pallas=True):
    # GraphEmbedding.__init__: prepend a zero row to the new embedding table.
    new_emb = jnp.concatenate(
        [jnp.zeros((1, HIDDEN), jnp.float32), p['new_emb_arg']], axis=0)   # (L+2, H)

    # GraphEmbedding.weight(): edge_features = new_emb[1:][:-1] -> graph encoder.
    edge_features = new_emb[1:, :][:-1, :]                                 # (L, H)

    # ---- GraphEncoder (graphormer) preprocessing: plain-JAX glue ----
    label_mask = (label_name != PAD_TOKEN_ID)
    name_emb = p['orig_emb'][label_name]                                   # (L, T, H)
    pooled = ((name_emb * label_mask[..., None].astype(jnp.float32)).sum(axis=1)
              / label_mask.sum(axis=1)[:, None].astype(jnp.float32))
    label_emb = edge_features + pooled + p['id_emb']                       # id_embedding(arange)
    dist = p['dist_emb'][distance_mat]                                     # (1, L*L, 1)
    edge = p['edge_emb'][edge_mat].sum(axis=1)                             # (L*L, 1)
    extra_attn = dist + edge / (distance_mat.reshape(-1, 1).astype(jnp.float32) + 1e-8)
    extra_attn = extra_attn.reshape(LABEL_NUM, LABEL_NUM)

    if use_pallas:
        # GraphLayer + fused-table F.embedding gather in ONE pallas_call.
        return fused_forward_pallas(x, label_emb, extra_attn, p, new_emb[-1:, :])

    # reference path
    graph_out = graph_layer_ref(label_emb, extra_attn, p)
    edge_features = jnp.concatenate([graph_out, new_emb[-1:, :]], axis=0)  # (L+1, H)
    weight = jnp.concatenate([p['orig_emb'], edge_features], axis=0)       # (EMB_SIZE, H)
    return weight[x]


# ------------------------------------ main ------------------------------------
if __name__ == "__main__":
    key = jax.random.PRNGKey(0)
    params, label_name = init_params(key)
    distance_mat, edge_mat = build_graph_tables(LABEL_NUM)

    # token ids index the fused table of EMB_SIZE = 39 rows
    x = jax.random.randint(jax.random.fold_in(key, 123), (2, 8), 0, EMB_SIZE,
                           dtype=jnp.int32)

    fwd = jax.jit(lambda toks: graph_embedding_forward(
        toks, params, label_name, distance_mat, edge_mat, use_pallas=True))
    out = jax.block_until_ready(fwd(x))

    ref = graph_embedding_forward(x, params, label_name, distance_mat, edge_mat,
                                  use_pallas=False)

    assert out.shape == (2, 8, HIDDEN), out.shape
    max_err = float(jnp.max(jnp.abs(out - ref)))
    assert max_err < 2e-3, f"mismatch vs reference: max abs err = {max_err}"
    print("KERNEL_OK")
</pallas_src>

<mosaic_0001>
module attributes {stable_mosaic.version = 11 : i64} {
  func.func @fused_graph_embedding_kernel(%arg0: memref<8x32xf32, #tpu.memory_space<vmem>>, %arg1: memref<8x32xf32, #tpu.memory_space<vmem>>, %arg2: memref<32x96xf32, #tpu.memory_space<vmem>>, %arg3: memref<32x128xf32, #tpu.memory_space<vmem>>, %arg4: memref<64x32xf32, #tpu.memory_space<vmem>>, %arg5: memref<8x96xf32, #tpu.memory_space<vmem>>, %arg6: memref<31x32xf32, #tpu.memory_space<vmem>>, %arg7: memref<16x1xi32, #tpu.memory_space<vmem>>, %arg8: memref<16x32xf32, #tpu.memory_space<vmem>>) attributes {dimension_semantics = [], scalar_prefetch = 0 : i64, scratch_operands = 0 : i64, tpu.core_type = #tpu.core_type<tc>} {
    %c0 = arith.constant 0 : index
    %c0_0 = arith.constant 0 : index
    %0 = vector.load %arg0[%c0, %c0_0] : memref<8x32xf32, #tpu.memory_space<vmem>>, vector<8x32xf32>
    %c0_1 = arith.constant 0 : index
    %c0_2 = arith.constant 0 : index
    %1 = vector.load %arg5[%c0_1, %c0_2] : memref<8x96xf32, #tpu.memory_space<vmem>>, vector<8x96xf32>
    %c0_3 = arith.constant 0 : index
    %c0_4 = arith.constant 0 : index
    %2 = vector.load %arg3[%c0_3, %c0_4] : memref<32x128xf32, #tpu.memory_space<vmem>>, vector<32x128xf32>
    %3 = vector.extract_strided_slice %2 {offsets = [0, 0], sizes = [32, 32], strides = [1, 1]} : vector<32x128xf32> to vector<32x32xf32>
    %4 = vector.extract_strided_slice %2 {offsets = [0, 32], sizes = [32, 64], strides = [1, 1]} : vector<32x128xf32> to vector<32x64xf32>
    %5 = vector.extract_strided_slice %2 {offsets = [0, 96], sizes = [32, 32], strides = [1, 1]} : vector<32x128xf32> to vector<32x32xf32>
    %c0_5 = arith.constant 0 : index
    %c0_6 = arith.constant 0 : index
    %6 = vector.load %arg2[%c0_5, %c0_6] : memref<32x96xf32, #tpu.memory_space<vmem>>, vector<32x96xf32>
    %cst = arith.constant dense<0.000000e+00> : vector<8x96xf32>
    %7 = tpu.matmul %0, %6, %cst {dimension_numbers = #tpu.dot_dimension_numbers<[1], [0], [0], [1], [0, 0, 1, 1], [], []>} : vector<8x32xf32>, vector<32x96xf32>, vector<8x96xf32> -> vector<8x96xf32>
    %8 = vector.extract_strided_slice %1 {offsets = [0, 0], sizes = [1, 96], strides = [1, 1]} : vector<8x96xf32> to vector<1x96xf32>
    %9 = vector.broadcast %8 : vector<1x96xf32> to vector<8x96xf32>
    %10 = arith.addf %7, %9 : vector<8x96xf32>
    %11 = vector.extract_strided_slice %10 {offsets = [0, 0], sizes = [8, 32], strides = [1, 1]} : vector<8x96xf32> to vector<8x32xf32>
    %12 = vector.extract_strided_slice %10 {offsets = [0, 32], sizes = [8, 32], strides = [1, 1]} : vector<8x96xf32> to vector<8x32xf32>
    %13 = vector.extract_strided_slice %10 {offsets = [0, 64], sizes = [8, 32], strides = [1, 1]} : vector<8x96xf32> to vector<8x32xf32>
    %14 = tpu.concatenate %12, %12, %12, %12 in 0 : vector<8x32xf32>, vector<8x32xf32>, vector<8x32xf32>, vector<8x32xf32> -> vector<32x32xf32>
    %15 = arith.mulf %14, %5 : vector<32x32xf32>
    %16 = tpu.concatenate %13, %13, %13, %13 in 0 : vector<8x32xf32>, vector<8x32xf32>, vector<8x32xf32>, vector<8x32xf32> -> vector<32x32xf32>
    %17 = arith.mulf %16, %5 : vector<32x32xf32>
    %18 = tpu.transpose %15, [1, 0] : vector<32x32xf32> -> vector<32x32xf32>
    %cst_7 = arith.constant dense<0.000000e+00> : vector<8x32xf32>
    %19 = tpu.matmul %11, %18, %cst_7 {dimension_numbers = #tpu.dot_dimension_numbers<[1], [0], [0], [1], [0, 0, 1, 1], [], []>} : vector<8x32xf32>, vector<32x32xf32>, vector<8x32xf32> -> vector<8x32xf32>
    %c0_8 = arith.constant 0 : index
    %c0_9 = arith.constant 0 : index
    %20 = vector.load %arg1[%c0_8, %c0_9] : memref<8x32xf32, #tpu.memory_space<vmem>>, vector<8x32xf32>
    %21 = arith.addf %19, %20 : vector<8x32xf32>
    %cst_10 = arith.constant dense<0xFF800000> : vector<8xf32>
    %22 = vector.multi_reduction <maximumf>, %21, %cst_10 [1] : vector<8x32xf32> to vector<8xf32>
    %23 = vector.shape_cast %22 : vector<8xf32> to vector<8x1xf32>
    %24 = vector.broadcast %23 : vector<8x1xf32> to vector<8x32xf32>
    %25 = arith.subf %21, %24 : vector<8x32xf32>
    %26 = math.exp %25 : vector<8x32xf32>
    %cst_11 = arith.constant dense<0.000000e+00> : vector<8x32xf32>
    %27 = tpu.matmul %26, %5, %cst_11 {dimension_numbers = #tpu.dot_dimension_numbers<[1], [0], [0], [1], [0, 0, 1, 1], [], []>} : vector<8x32xf32>, vector<32x32xf32>, vector<8x32xf32> -> vector<8x32xf32>
    %28 = tpu.reciprocal %27 {approx = true} : vector<8x32xf32> -> vector<8x32xf32>
    %29 = arith.mulf %26, %28 : vector<8x32xf32>
    %cst_12 = arith.constant dense<0.000000e+00> : vector<8x32xf32>
    %30 = tpu.matmul %29, %17, %cst_12 {dimension_numbers = #tpu.dot_dimension_numbers<[1], [0], [0], [1], [0, 0, 1, 1], [], []>} : vector<8x32xf32>, vector<32x32xf32>, vector<8x32xf32> -> vector<8x32xf32>
    %cst_13 = arith.constant dense<0.000000e+00> : vector<8x32xf32>
    %31 = tpu.matmul %30, %3, %cst_13 {dimension_numbers = #tpu.dot_dimension_numbers<[1], [0], [0], [1], [0, 0, 1, 1], [], []>} : vector<8x32xf32>, vector<32x32xf32>, vector<8x32xf32> -> vector<8x32xf32>
    %32 = vector.extract_strided_slice %1 {offsets = [1, 0], sizes = [1, 32], strides = [1, 1]} : vector<8x96xf32> to vector<1x32xf32>
    %33 = vector.broadcast %32 : vector<1x32xf32> to vector<8x32xf32>
    %34 = arith.addf %31, %33 : vector<8x32xf32>
    %35 = arith.addf %0, %34 : vector<8x32xf32>
    %36 = vector.extract_strided_slice %1 {offsets = [4, 0], sizes = [1, 32], strides = [1, 1]} : vector<8x96xf32> to vector<1x32xf32>
    %37 = vector.extract_strided_slice %1 {offsets = [5, 0], sizes = [1, 32], strides = [1, 1]} : vector<8x96xf32> to vector<1x32xf32>
    %cst_14 = arith.constant dense<0.000000e+00> : vector<8xf32>
    %38 = vector.multi_reduction <add>, %35, %cst_14 [1] : vector<8x32xf32> to vector<8xf32>
    %39 = vector.shape_cast %38 : vector<8xf32> to vector<8x1xf32>
    %cst_15 = arith.constant 3.200000e+01 : f32
    %40 = vector.broadcast %cst_15 : f32 to vector<8x1xf32>
    %41 = arith.divf %39, %40 : vector<8x1xf32>
    %42 = vector.broadcast %41 : vector<8x1xf32> to vector<8x32xf32>
    %43 = arith.subf %35, %42 : vector<8x32xf32>
    %44 = vector.broadcast %41 : vector<8x1xf32> to vector<8x32xf32>
    %45 = arith.subf %35, %44 : vector<8x32xf32>
    %46 = arith.mulf %43, %45 : vector<8x32xf32>
    %cst_16 = arith.constant dense<0.000000e+00> : vector<8xf32>
    %47 = vector.multi_reduction <add>, %46, %cst_16 [1] : vector<8x32xf32> to vector<8xf32>
    %48 = vector.shape_cast %47 : vector<8xf32> to vector<8x1xf32>
    %cst_17 = arith.constant 3.200000e+01 : f32
    %49 = vector.broadcast %cst_17 : f32 to vector<8x1xf32>
    %50 = arith.divf %48, %49 : vector<8x1xf32>
    %51 = vector.broadcast %41 : vector<8x1xf32> to vector<8x32xf32>
    %52 = arith.subf %35, %51 : vector<8x32xf32>
    %cst_18 = arith.constant 9.99999974E-6 : f32
    %53 = vector.broadcast %cst_18 : f32 to vector<8x1xf32>
    %54 = arith.addf %50, %53 : vector<8x1xf32>
    %55 = math.rsqrt %54 : vector<8x1xf32>
    %56 = vector.broadcast %55 : vector<8x1xf32> to vector<8x32xf32>
    %57 = arith.mulf %52, %56 : vector<8x32xf32>
    %58 = vector.broadcast %36 : vector<1x32xf32> to vector<8x32xf32>
    %59 = arith.mulf %57, %58 : vector<8x32xf32>
    %60 = vector.broadcast %37 : vector<1x32xf32> to vector<8x32xf32>
    %61 = arith.addf %59, %60 : vector<8x32xf32>
    %cst_19 = arith.constant dense<0.000000e+00> : vector<8x64xf32>
    %62 = tpu.matmul %61, %4, %cst_19 {dimension_numbers = #tpu.dot_dimension_numbers<[1], [0], [0], [1], [0, 0, 1, 1], [], []>} : vector<8x32xf32>, vector<32x64xf32>, vector<8x64xf32> -> vector<8x64xf32>
    %63 = vector.extract_strided_slice %1 {offsets = [2, 0], sizes = [1, 64], strides = [1, 1]} : vector<8x96xf32> to vector<1x64xf32>
    %64 = vector.broadcast %63 : vector<1x64xf32> to vector<8x64xf32>
    %65 = arith.addf %62, %64 : vector<8x64xf32>
    %cst_20 = arith.constant 5.000000e-01 : f32
    %66 = vector.broadcast %cst_20 : f32 to vector<8x64xf32>
    %67 = arith.mulf %66, %65 : vector<8x64xf32>
    %cst_21 = arith.constant 4.471500e-02 : f32
    %68 = vector.broadcast %cst_21 : f32 to vector<8x64xf32>
    %69 = arith.mulf %68, %65 : vector<8x64xf32>
    %70 = arith.mulf %69, %65 : vector<8x64xf32>
    %71 = arith.mulf %70, %65 : vector<8x64xf32>
    %72 = arith.addf %65, %71 : vector<8x64xf32>
    %cst_22 = arith.constant 0.797884583 : f32
    %73 = vector.broadcast %cst_22 : f32 to vector<8x64xf32>
    %74 = arith.mulf %73, %72 : vector<8x64xf32>
    %75 = math.tanh %74 : vector<8x64xf32>
    %cst_23 = arith.constant 1.000000e+00 : f32
    %76 = vector.broadcast %cst_23 : f32 to vector<8x64xf32>
    %77 = arith.addf %76, %75 : vector<8x64xf32>
    %78 = arith.mulf %67, %77 : vector<8x64xf32>
    %c0_24 = arith.constant 0 : index
    %c0_25 = arith.constant 0 : index
    %79 = vector.load %arg4[%c0_24, %c0_25] : memref<64x32xf32, #tpu.memory_space<vmem>>, vector<64x32xf32>
    %cst_26 = arith.constant dense<0.000000e+00> : vector<8x32xf32>
    %80 = tpu.matmul %78, %79, %cst_26 {dimension_numbers = #tpu.dot_dimension_numbers<[1], [0], [0], [1], [0, 0, 1, 1], [], []>} : vector<8x64xf32>, vector<64x32xf32>, vector<8x32xf32> -> vector<8x32xf32>
    %81 = vector.extract_strided_slice %1 {offsets = [3, 0], sizes = [1, 32], strides = [1, 1]} : vector<8x96xf32> to vector<1x32xf32>
    %82 = vector.broadcast %81 : vector<1x32xf32> to vector<8x32xf32>
    %83 = arith.addf %80, %82 : vector<8x32xf32>
    %84 = arith.addf %61, %83 : vector<8x32xf32>
    %85 = vector.extract_strided_slice %1 {offsets = [6, 0], sizes = [1, 32], strides = [1, 1]} : vector<8x96xf32> to vector<1x32xf32>
    %86 = vector.extract_strided_slice %1 {offsets = [7, 0], sizes = [1, 32], strides = [1, 1]} : vector<8x96xf32> to vector<1x32xf32>
    %cst_27 = arith.constant dense<0.000000e+00> : vector<8xf32>
    %87 = vector.multi_reduction <add>, %84, %cst_27 [1] : vector<8x32xf32> to vector<8xf32>
    %88 = vector.shape_cast %87 : vector<8xf32> to vector<8x1xf32>
    %cst_28 = arith.constant 3.200000e+01 : f32
    %89 = vector.broadcast %cst_28 : f32 to vector<8x1xf32>
    %90 = arith.divf %88, %89 : vector<8x1xf32>
    %91 = vector.broadcast %90 : vector<8x1xf32> to vector<8x32xf32>
    %92 = arith.subf %84, %91 : vector<8x32xf32>
    %93 = vector.broadcast %90 : vector<8x1xf32> to vector<8x32xf32>
    %94 = arith.subf %84, %93 : vector<8x32xf32>
    %95 = arith.mulf %92, %94 : vector<8x32xf32>
    %cst_29 = arith.constant dense<0.000000e+00> : vector<8xf32>
    %96 = vector.multi_reduction <add>, %95, %cst_29 [1] : vector<8x32xf32> to vector<8xf32>
    %97 = vector.shape_cast %96 : vector<8xf32> to vector<8x1xf32>
    %cst_30 = arith.constant 3.200000e+01 : f32
    %98 = vector.broadcast %cst_30 : f32 to vector<8x1xf32>
    %99 = arith.divf %97, %98 : vector<8x1xf32>
    %100 = vector.broadcast %90 : vector<8x1xf32> to vector<8x32xf32>
    %101 = arith.subf %84, %100 : vector<8x32xf32>
    %cst_31 = arith.constant 9.99999974E-6 : f32
    %102 = vector.broadcast %cst_31 : f32 to vector<8x1xf32>
    %103 = arith.addf %99, %102 : vector<8x1xf32>
    %104 = math.rsqrt %103 : vector<8x1xf32>
    %105 = vector.broadcast %104 : vector<8x1xf32> to vector<8x32xf32>
    %106 = arith.mulf %101, %105 : vector<8x32xf32>
    %107 = vector.broadcast %85 : vector<1x32xf32> to vector<8x32xf32>
    %108 = arith.mulf %106, %107 : vector<8x32xf32>
    %109 = vector.broadcast %86 : vector<1x32xf32> to vector<8x32xf32>
    %110 = arith.addf %108, %109 : vector<8x32xf32>
    %c0_32 = arith.constant 0 : index
    %c0_33 = arith.constant 0 : index
    %111 = vector.load %arg7[%c0_32, %c0_33] : memref<16x1xi32, #tpu.memory_space<vmem>>, vector<16x1xi32>
    %112 = tpu.iota {dimensions = array<i32: 1>} : vector<16x31xi32>
    %c38_i32 = arith.constant 38 : i32
    %113 = vector.broadcast %c38_i32 : i32 to vector<16x1xi32>
    %114 = arith.cmpi eq, %111, %113 : vector<16x1xi32>
    %c30_i32 = arith.constant 30 : i32
    %115 = vector.broadcast %c30_i32 : i32 to vector<16x1xi32>
    %116 = arith.select %114, %115, %111 : vector<16x1xi1>, vector<16x1xi32>
    %c30_i32_34 = arith.constant 30 : i32
    %117 = vector.broadcast %c30_i32_34 : i32 to vector<16x1xi32>
    %118 = arith.cmpi slt, %111, %117 : vector<16x1xi32>
    %c38_i32_35 = arith.constant 38 : i32
    %119 = vector.broadcast %c38_i32_35 : i32 to vector<16x1xi32>
    %120 = arith.cmpi eq, %111, %119 : vector<16x1xi32>
    %121 = arith.ori %118, %120 : vector<16x1xi1>
    %122 = arith.extui %121 : vector<16x1xi1> to vector<16x1xi32>
    %123 = arith.sitofp %122 : vector<16x1xi32> to vector<16x1xf32>
    %124 = vector.broadcast %116 : vector<16x1xi32> to vector<16x31xi32>
    %125 = arith.cmpi eq, %112, %124 : vector<16x31xi32>
    %126 = arith.extui %125 : vector<16x31xi1> to vector<16x31xi32>
    %127 = arith.sitofp %126 : vector<16x31xi32> to vector<16x31xf32>
    %128 = vector.broadcast %123 : vector<16x1xf32> to vector<16x31xf32>
    %129 = arith.mulf %127, %128 : vector<16x31xf32>
    %130 = tpu.iota {dimensions = array<i32: 1>} : vector<16x8xi32>
    %c30_i32_36 = arith.constant 30 : i32
    %131 = vector.broadcast %c30_i32_36 : i32 to vector<16x1xi32>
    %132 = arith.cmpi sge, %111, %131 : vector<16x1xi32>
    %c38_i32_37 = arith.constant 38 : i32
    %133 = vector.broadcast %c38_i32_37 : i32 to vector<16x1xi32>
    %134 = arith.cmpi slt, %111, %133 : vector<16x1xi32>
    %135 = arith.andi %132, %134 : vector<16x1xi1>
    %136 = arith.extui %135 : vector<16x1xi1> to vector<16x1xi32>
    %137 = arith.sitofp %136 : vector<16x1xi32> to vector<16x1xf32>
    %c30_i32_38 = arith.constant 30 : i32
    %138 = vector.broadcast %c30_i32_38 : i32 to vector<16x1xi32>
    %139 = arith.subi %111, %138 : vector<16x1xi32>
    %140 = vector.broadcast %139 : vector<16x1xi32> to vector<16x8xi32>
    %141 = arith.cmpi eq, %130, %140 : vector<16x8xi32>
    %142 = arith.extui %141 : vector<16x8xi1> to vector<16x8xi32>
    %143 = arith.sitofp %142 : vector<16x8xi32> to vector<16x8xf32>
    %144 = vector.broadcast %137 : vector<16x1xf32> to vector<16x8xf32>
    %145 = arith.mulf %143, %144 : vector<16x8xf32>
    %c0_39 = arith.constant 0 : index
    %c0_40 = arith.constant 0 : index
    %146 = vector.load %arg6[%c0_39, %c0_40] : memref<31x32xf32, #tpu.memory_space<vmem>>, vector<31x32xf32>
    %cst_41 = arith.constant dense<0.000000e+00> : vector<16x32xf32>
    %147 = tpu.matmul %129, %146, %cst_41 {dimension_numbers = #tpu.dot_dimension_numbers<[1], [0], [0], [1], [0, 0, 1, 1], [], []>} : vector<16x31xf32>, vector<31x32xf32>, vector<16x32xf32> -> vector<16x32xf32>
    %cst_42 = arith.constant dense<0.000000e+00> : vector<16x32xf32>
    %148 = tpu.matmul %145, %110, %cst_42 {dimension_numbers = #tpu.dot_dimension_numbers<[1], [0], [0], [1], [0, 0, 1, 1], [], []>} : vector<16x8xf32>, vector<8x32xf32>, vector<16x32xf32> -> vector<16x32xf32>
    %149 = arith.addf %147, %148 : vector<16x32xf32>
    %c0_43 = arith.constant 0 : index
    %c0_44 = arith.constant 0 : index
    %150 = vector.load %arg8[%c0_43, %c0_44] : memref<16x32xf32, #tpu.memory_space<vmem>>, vector<16x32xf32>
    tpu.vector_store %arg8[%c0_43, %c0_44], %149 {strides = array<i32>} : memref<16x32xf32, #tpu.memory_space<vmem>>, vector<16x32xf32>,
    return
  }
}

</mosaic_0001>

<bundles_post_ra>
// kernel: tile.7
= control target key start
LH: loop header
LB: loop body
LE: loop exit
PB: predicated region body
PF: predicated region fallthrough
CT: control target
= control target key end

     0   :  { %vm42_vm0 = vcmask 1047556   ;;  %vm44_vm1 = vcmask 64512   ;;  %s93_s22 = smov 8   ;;  %s94_s25 = smov 16   ;;  %vm54_vm2 = vcmask 261312   ;;  %vm64_vm3 = vcmask 195712   ;;  %s146_s0 = inlined_call_operand.vmem [shape: f32[8,4,8], index: 0, kind: input, shape index: {}]   ;;  %s147_s1 = inlined_call_operand.vmem [shape: f32[8,32], index: 1, kind: output, shape index: {}]  }
   0x1   :  { %v82_v0 = vld [vmem:[%s146_s0 + $0x1c] sm:$0xf]  ;;  %v83_v1 = vld [vmem:[%s146_s0 + $0x18] sm:$0xf]  ;;  %v84_v2 = vld [vmem:[%s146_s0 + $0x14] sm:$0xf] }
   0x2   :  { %8 = vst [vmem:[#allocation0 + $0x38] sm:$0xf] %v82_v0  ;;  %13 = vst [vmem:[#allocation0 + $0x30] sm:$0xf] %v83_v1  ;;  %v85_v3 = vld [vmem:[%s146_s0 + $0x10] sm:$0xf] }
   0x3   :  { %18 = vst [vmem:[#allocation0 + $0x28] sm:$0xf] %v84_v2  ;;  %v86_v4 = vld [vmem:[%s146_s0 + $0xc] sm:$0xf]  ;;  %v87_v5 = vld [vmem:[%s146_s0 + $0x8] sm:$0xf] }
   0x4   :  { %23 = vst [vmem:[#allocation0 + $0x20] sm:$0xf] %v85_v3  ;;  %28 = vst [vmem:[#allocation0 + $0x18] sm:$0xf] %v86_v4  ;;  %v88_v6 = vld [vmem:[%s146_s0 + $0x4] sm:$0xf] }
   0x5   :  { %33 = vst [vmem:[#allocation0 + $0x10] sm:$0xf] %v87_v5  ;;  %v38_v7 = vld [vmem:[%s146_s0] sm:$0xf]  ;;  %37 = vst [vmem:[#allocation0 + $0x8] sm:$0xf] %v88_v6 }
   0x6   :  { %39 = vst [vmem:[#allocation0] sm:$0xf] %v38_v7  ;;  %s92_s0 = smov 24   ;;  %vm74_vm4 = vcmask 130112  }
   0xb   :  { %v49_v8 = vld [vmem:[#allocation0 + $0x3] ss:$8 sm:$0xf0]   ;;  %v59_v9 = vld [vmem:[#allocation0 + $0x2] ss:$8 sm:$0xf0]  }
   0xc   :  { %v69_v14 = vld [vmem:[#allocation0 + $0x1] ss:$8 sm:$0xf0]   ;;  %v41_v17 = vld [vmem:[#allocation0] ss:$8 sm:$0xf0]  }
   0xd   :  { %v47_v10 = vld [vmem:[#allocation0 + $0x3] ss:$8 sm:$0xf]   ;;  %v57_v11 = vld [vmem:[#allocation0 + $0x2] ss:$8 sm:$0xf]  }
   0xe   :  { %v51_v12 = vsel %vm42_vm0, %v49_v8, %v47_v10  ;;  %v67_v13 = vld [vmem:[#allocation0 + $0x1] ss:$8 sm:$0xf]   ;;  %v40_v16 = vld [vmem:[#allocation0] ss:$8 sm:$0xf]   ;;  %v61_v18 = vsel %vm42_vm0, %v59_v9, %v57_v11 }
   0xf   :  { %52 = vrot.lane.b32.xlu0 %v51_v12, %s92_s0  ;;  %v71_v15 = vsel %vm42_vm0, %v69_v14, %v67_v13  ;;  %v43_v19 = vsel %vm42_vm0, %v41_v17, %v40_v16 }
  0x10   :  { %72 = vrot.lane.b32.xlu1 %v71_v15, %s93_s22  ;;  %45 = vst.msk [vmem:[%s147_s1] sm:$0xff] %vm44_vm1, %v43_v19  }
  0x13   :  { %62 = vrot.lane.b32.xlu0 %v61_v18, %s94_s25 }
  0x81   :  { %v53_v20 = vpop.permute.xlu0 %52  }
  0x82   :  { %55 = vst.msk [vmem:[%s147_s1] sm:$0xff] %vm54_vm2, %v53_v20   ;;  %v73_v21 = vpop.permute.xlu1 %72  }
  0x85   :  { %v63_v22 = vpop.permute.xlu0 %62  }
  0x86   :  { %65 = vst.msk [vmem:[%s147_s1] sm:$0xff] %vm64_vm3, %v63_v22  }
  0x87   :  { %75 = vst.msk [vmem:[%s147_s1] sm:$0xff] %vm74_vm4, %v73_v21  }

// kernel: _lambda_.1
= control target key start
LH: loop header
LB: loop body
LE: loop exit
PB: predicated region body
PF: predicated region fallthrough
CT: control target
= control target key end

     0   :  { %v1318_v3 = vmov 0.0|0.0   ;;  %vm1319_vm0 = vmmov 0   ;;  %v1320_v6 = vmov 0.0   ;;  %s1321_s15 = smov 64   ;;  %s1590_s0 = inlined_call_operand.vmem [shape: f32[8,32], index: 0, kind: input, shape index: {}]   ;;  %s1591_s1 = inlined_call_operand.vmem [shape: f32[8,32], index: 1, kind: input, shape index: {}]   ;;  %s1592_s2 = inlined_call_operand.vmem [shape: f32[32,96], index: 2, kind: input, shape index: {}]   ;;  %s1593_s3 = inlined_call_operand.vmem [shape: f32[32,128], index: 3, kind: input, shape index: {}]   ;;  %s1594_s4 = inlined_call_operand.vmem [shape: f32[64,32], index: 4, kind: input, shape index: {}]   ;;  %s1595_s5 = inlined_call_operand.vmem [shape: f32[8,96], index: 5, kind: input, shape index: {}]   ;;  %s1596_s6 = inlined_call_operand.vmem [shape: f32[31,32], index: 6, kind: input, shape index: {}]   ;;  %s1597_s7 = inlined_call_operand.vmem [shape: s32[16,1], index: 7, kind: input, shape index: {}]   ;;  %s1598_s8 = inlined_call_operand.hbm [shape: f32[16,32], index: 8, kind: output, shape index: {}]  }
   0x1   :  { %v36_v0 = vld [vmem:[%s1592_s2] sm:$0xff]  ;;  %v37_v1 = vld [vmem:[%s1592_s2 + $0x8] sm:$0xff]  ;;  %v38_v2 = vld [vmem:[%s1592_s2 + $0x10] sm:$0xff]  ;;  %1169 = vmatprep.subr.bf16.mxu0 %v1318_v3  ;;  %1076 = vmatprep.mubr.msk.f32.mxu0 %vm1319_vm0, %v1320_v6 }
   0x2   :  { %v1170_v4 = vpack.c.bf16 %v37_v1, %v36_v0  ;;  %v39_v5 = vld [vmem:[%s1592_s2 + $0x18] sm:$0xff]  ;;  %v1392_v7 = vld [vmem:[%s1593_s3 + $0x10] sm:$0xff]  ;;  %v1399_v8 = vld [vmem:[%s1593_s3] sm:$0xff]  ;;  %1175 = vmatprep.subr.bf16.mxu1 %v1318_v3 }
   0x3   :  { %126 = vrot.lane.b32.xlu1 %v1392_v7, %s1321_s15  ;;  %v1173_v9 = vpack.c.bf16 %v39_v5, %v38_v2  ;;  %122 = vrot.lane.b32.xlu0 %v1399_v8, %s1321_s15  ;;  %v1407_v10 = vld [vmem:[%s1593_s3 + $0x18] sm:$0xff] }
   0x4   :  { %1171 = vmatpush3.bf16.msra.mxu0 %v1170_v4 }
   0x5   :  { %13 = vsyncpa [#allocation3], 0  ;;  %1172 = vmatprep.subr.bf16.mxu0 %v1318_v3  ;;  %v1413_v11 = vld [vmem:[%s1593_s3 + $0x8] sm:$0xff]  ;;  %1087 = vmatprep.mubr.msk.f32.mxu1 %vm1319_vm0, %v1320_v6  ;;  %v1422_v12 = vld [vmem:[%s1590_s0] sm:$0xff]  ;;  %vm44_vm1 = vcmask 261120   ;;  %v40_v13 = vlaneseq  ;;  %s1322_s23 = smov 96   ;;  %v1257_v32 = vpack.i.bf16 %v1407_v10, %v1392_v7 }
   0x6   :  { %v1438_v18 = vld [vmem:[%s1595_s5] sm:$0xff]  ;;  %v1252_v31 = vpack.i.bf16 %v1413_v11, %v1399_v8  ;;  %s1323_s5 = smov 32   ;;  %vm1451_vm2 = vmpackc.low %vm44_vm1, %vm44_vm1  ;;  %vm630_vm3 = vcmask 523264   ;;  %vm808_vm12 = vcmask 64512  }
   0x7   :  { %128 = vrot.lane.b32.xlu1 %v1407_v10, %s1321_s15  ;;  %124 = vrot.lane.b32.xlu0 %v1413_v11, %s1321_s15  ;;  %v1432_v14 = vshrl.u32 %v40_v13, 7  ;;  %v154_v61 = vld [vmem:[%s1591_s1] sm:$0xff] }
   0x8   :  { %1174 = vmatpush3.bf16.msra.mxu0 %v1173_v9 }
   0x9   :  { %1183 = vmatprep.subr.bf16.mxu0 %v1318_v3  ;;  %v42_v16 = vsub.s32 0, %v1432_v14 }
   0xb   :  { %1077 = vmatmul.mubr.msk.f32.vlgmr.msra.gmra.mrb[0].mxu0 %vm44_vm1, %v1422_v12  ;;  %v43_v19 = vrot.slane %v1438_v18, %v42_v16 }
   0xc   :  { %1098 = vmatprep.mubr.msk.f32.mxu0 %vm1319_vm0, %v1320_v6 }
  0x75   :  { %v127_v15 = vpop.permute.xlu1 %126  ;;  %v123_v17 = vpop.permute.xlu0 %122 }
  0x79   :  { %v129_v20 = vpop.permute.xlu1 %128  ;;  %v125_v22 = vpop.permute.xlu0 %124 }
  0xde   :  { %v114_v21 = vpop.f32.mrb[0].mxu0 }
  0xdf   :  { %v115_v23 = vadd.f32 %v114_v21, %v43_v19  ;;  %v1078_v24 = vpop.f32.mrb[1].mxu0 }
  0xe0   :  { %v1196_v24 = vpack.c.bf16 %v1413_v11, %v1399_v8 }
  0xe1   :  { %v136_v25 = vmul.f32 %v127_v15, %v115_v23  ;;  %v137_v26 = vmul.f32 %v129_v20, %v115_v23  ;;  %v134_v27 = vmul.f32 %v123_v17, %v115_v23  ;;  %v135_v28 = vmul.f32 %v125_v22, %v115_v23 }
  0xe3   :  { %v1247_v29 = vpack.i.bf16 %v137_v26, %v136_v25  ;;  %v1242_v30 = vpack.i.bf16 %v135_v28, %v134_v27  ;;  %v1199_v25 = vpack.c.bf16 %v1407_v10, %v1392_v7 }
  0xe5   :  { %1248 = vrot.lane.b32.xlu1 %v1247_v29, %s1322_s23  ;;  %1243 = vrot.lane.b32.xlu0 %v1242_v30, %s1322_s23 }
  0xe9   :  { %1253 = vrot.lane.b32.xlu1 %v1252_v31, %s1323_s5 }
  0xed   :  { %1258 = vrot.lane.b32.xlu1 %v1257_v32, %s1323_s5 }
  0xf1   :  { %138 = vrot.lane.b32.xlu1 %v1399_v8, %s1322_s23 }
  0xf5   :  { %140 = vrot.lane.b32.xlu1 %v1413_v11, %s1322_s23  ;;  %v432_v11 = vsub.s32 1, %v1432_v14 }
  0xf7   :  { %v433_v30 = vrot.slane %v1438_v18, %v432_v11 }
  0xf9   :  { %142 = vrot.lane.b32.xlu1 %v1392_v7, %s1322_s23 }
  0xfd   :  { %144 = vrot.lane.b32.xlu1 %v1407_v10, %s1322_s23 }
 0x157   :  { %v1249_v33 = vpop.permute.xlu1 %1248  ;;  %v1244_v34 = vpop.permute.xlu0 %1243 }
 0x158   :  { %v1246_v35 = vunpack.i.h.bf16 %v1244_v34  ;;  %v1245_v36 = vunpack.i.l.bf16 %v1244_v34  ;;  %v1251_v42 = vunpack.i.h.bf16 %v1249_v33  ;;  %v1250_v43 = vunpack.i.l.bf16 %v1249_v33 }
 0x15a   :  { %v1176_v38 = vpack.c.bf16 %v1246_v35, %v1245_v36  ;;  %v1180_v48 = vpack.c.bf16 %v1251_v42, %v1250_v43 }
 0x15b   :  { %v1254_v39 = vpop.permute.xlu1 %1253 }
 0x15c   :  { %v1256_v40 = vunpack.i.h.bf16 %v1254_v39  ;;  %v1255_v41 = vunpack.i.l.bf16 %v1254_v39  ;;  %1178 = vmatpush3.bf16.xpose.msk.msra.mxu1 %vm1451_vm2, %v1176_v38 }
 0x15d   :  { %1179 = vmatprep.subr.bf16.mxu1 %v1318_v3 }
 0x15e   :  { %v1184_v44 = vpack.c.bf16 %v1256_v40, %v1255_v41 }
 0x15f   :  { %v1259_v45 = vpop.permute.xlu1 %1258 }
 0x160   :  { %v1261_v46 = vunpack.i.h.bf16 %v1259_v45  ;;  %v1260_v47 = vunpack.i.l.bf16 %v1259_v45  ;;  %1185 = vmatpush3.bf16.msra.mxu0 %v1184_v44  ;;  %v524_v44 = vsub.s32 4, %v1432_v14  ;;  %v529_v45 = vsub.s32 5, %v1432_v14 }
 0x161   :  { %1186 = vmatprep.subr.bf16.mxu0 %v1318_v3 }
 0x162   :  { %v1187_v49 = vpack.c.bf16 %v1261_v46, %v1260_v47 }
 0x163   :  { %v139_v50 = vpop.permute.xlu1 %138 }
 0x164   :  { %1182 = vmatpush3.bf16.xpose.msk.msra.mxu1 %vm1451_vm2, %v1180_v48  ;;  %1188 = vmatpush3.bf16.msra.mxu0 %v1187_v49  ;;  %v150_v52 = vmul.f32 %v139_v50, %v115_v23  ;;  %v530_v48 = vrot.slane %v1438_v18, %v529_v45 }
 0x165   :  { %1189 = vmatprep.subr.bf16.mxu0 %v1318_v3  ;;  %1195 = vmatprep.subr.bf16.mxu1 %v1318_v3 }
 0x167   :  { %v141_v51 = vpop.permute.xlu1 %140 }
 0x168   :  { %v151_v53 = vmul.f32 %v141_v51, %v115_v23  ;;  %v1202_v54 = vpack.c.bf16 %v141_v51, %v139_v50  ;;  %v618_v51 = vld [vmem:[%s1594_s4] sm:$0xff] }
 0x16a   :  { %v1262_v55 = vpack.i.bf16 %v151_v53, %v150_v52  ;;  %v619_v52 = vld [vmem:[%s1594_s4 + $0x8] sm:$0xff] }
 0x16b   :  { %v143_v56 = vpop.permute.xlu1 %142  ;;  %1088 = vmatmul.mubr.msk.f32.vlgmr.msra.gmra.mrb[0].mxu1 %vm44_vm1, %v115_v23  ;;  %v1208_v53 = vpack.c.bf16 %v619_v52, %v618_v51  ;;  %v720_v52 = vsub.s32 6, %v1432_v14 }
 0x16c   :  { %1263 = vrot.lane.b32.xlu1 %v1262_v55, %s1321_s15  ;;  %1120 = vmatprep.mubr.msk.f32.mxu1 %vm1319_vm0, %v1320_v6  ;;  %v152_v58 = vmul.f32 %v143_v56, %v115_v23  ;;  %v621_v55 = vld [vmem:[%s1594_s4 + $0x18] sm:$0xff] }
 0x16d   :  { %1197 = vmatpush3.bf16.msra.mxu1 %v1196_v24  ;;  %v1324_v24 = vmov 0  }
 0x16e   :  { %1198 = vmatprep.subr.bf16.mxu1 %v1318_v3  ;;  %1273 = vset.pattern.permute.xlu1 %v1324_v24 }
 0x16f   :  { %v145_v57 = vpop.permute.xlu1 %144  ;;  %1272 = vset.pattern.permute.xlu0 %v1324_v24 }
 0x170   :  { %v153_v59 = vmul.f32 %v145_v57, %v115_v23  ;;  %v1205_v8 = vpack.c.bf16 %v145_v57, %v143_v56  ;;  %v622_v57 = vld [vmem:[%s1594_s4 + $0x20] sm:$0xff] }
 0x171   :  { %1200 = vmatpush3.bf16.msra.mxu1 %v1199_v25 }
 0x172   :  { %v1267_v60 = vpack.i.bf16 %v153_v59, %v152_v58  ;;  %1207 = vmatprep.subr.bf16.mxu1 %v1318_v3  ;;  %v623_v58 = vld [vmem:[%s1594_s4 + $0x28] sm:$0xff] }
 0x173   :  { %v1214_v59 = vpack.c.bf16 %v623_v58, %v622_v57 }
 0x174   :  { %1268 = vrot.lane.b32.xlu1 %v1267_v60, %s1321_s15  ;;  %v624_v60 = vld [vmem:[%s1594_s4 + $0x30] sm:$0xff] }
 0x1de   :  { %v1264_v9 = vpop.permute.xlu1 %1263 }
 0x1df   :  { %v1266_v15 = vunpack.i.h.bf16 %v1264_v9  ;;  %v1265_v16 = vunpack.i.l.bf16 %v1264_v9 }
 0x1e1   :  { %v1190_v20 = vpack.c.bf16 %v1266_v15, %v1265_v16 }
 0x1e6   :  { %v1269_v17 = vpop.permute.xlu1 %1268 }
 0x1e7   :  { %v1271_v21 = vunpack.i.h.bf16 %v1269_v17  ;;  %v1270_v22 = vunpack.i.l.bf16 %v1269_v17 }
 0x1e9   :  { %v1193_v23 = vpack.c.bf16 %v1271_v21, %v1270_v22 }
 0x23e   :  { %v244_v62 = vpop.f32.mrb[0].mxu1 }
 0x23f   :  { %v245_v63 = vadd.f32 %v244_v62, %v154_v61  ;;  %v1089_v0 = vpop.f32.mrb[1].mxu1  ;;  %v625_v61 = vld [vmem:[%s1594_s4 + $0x38] sm:$0xff] }
 0x240   :  { %v1217_v62 = vpack.c.bf16 %v625_v61, %v624_v60  ;;  %v805_v60 = vld [vmem:[%s1596_s6 + $0x8] sm:$0xff] }
 0x241   :  { %v248_v1 = vsel %vm44_vm1, %v245_v63, -inf }
 0x242   :  { %249 = vmax.xlane.f32.xlu0 %v248_v1 }
 0x2cf   :  { %v250_v2 = vpop.xlane.xlu0 %249 }
 0x2d0   :  { %v251_v4 = vsub.f32 %v245_v63, %v250_v2  ;;  %v534_v63 = vsub.s32 2, %v1432_v14 }
 0x2d2   :  { %v252_v5 = vmul.f32 1.442695, %v251_v4  ;;  %v535_v0 = vrot.slane %v1438_v18, %v534_v63 }
 0x2d4   :  { %1284 = vpow2.f32 %v252_v5 }
 0x2de   :  { %v1285_v19 = vpop.eup %1284 }
 0x2df   :  { %1099 = vmatmul.mubr.msk.f32.vlgmr.msra.gmra.mrb[2].mxu0 %vm44_vm1, %v1285_v19 }
 0x2e0   :  { %1191 = vmatpush3.bf16.msra.mxu0 %v1190_v20  ;;  %1109 = vmatprep.mubr.msk.f32.mxu0 %vm1319_vm0, %v1320_v6 }
 0x2e1   :  { %1192 = vmatprep.subr.bf16.mxu0 %v1318_v3 }
 0x2e4   :  { %1194 = vmatpush3.bf16.msra.mxu0 %v1193_v23  ;;  %v728_v23 = vld [vmem:[%s1597_s7] sm:$0xff] }
 0x2e5   :  { %1201 = vmatprep.subr.bf16.mxu0 %v1318_v3  ;;  %vm768_vm4 = vcmp.ge.s32.totalorder %v728_v23, 30  ;;  %vm770_vm6 = vcmp.lt.s32.totalorder %v728_v23, 38  ;;  %vm732_vm13 = vcmp.eq.s32.totalorder %v728_v23, 38  ;;  %vm736_vm14 = vcmp.lt.s32.totalorder %v728_v23, 30 }
 0x2e6   :  { %vm772_vm8 = vmand %vm768_vm4, %vm770_vm6  ;;  %vm890_vm6 = vcmask 252928  }
 0x3b2   :  { %v335_v26 = vpop.f32.mrb[2].mxu0 }
 0x3b3   :  { %1286 = vrcp.f32 %v335_v26  ;;  %v1100_v27 = vpop.f32.mrb[3].mxu0  ;;  %v1009_v26 = vsel %vm772_vm8, 1.0, %v1320_v6 }
 0x3bd   :  { %v1287_v28 = vpop.eup %1286 }
 0x3be   :  { %v340_v29 = vmul.f32 %v1287_v28, %v1285_v19 }
 0x3c0   :  { %1110 = vmatmul.mubr.msk.f32.vlgmr.msra.gmra.mrb[4].mxu0 %vm44_vm1, %v340_v29  ;;  %v628_v29 = vsub.s32 3, %v1432_v14 }
 0x3c1   :  { %1203 = vmatpush3.bf16.msra.mxu0 %v1202_v54  ;;  %1131 = vmatprep.mubr.msk.f32.mxu0 %vm1319_vm0, %v1320_v6  ;;  %v620_v54 = vld [vmem:[%s1594_s4 + $0x10] sm:$0xff] }
 0x3c2   :  { %1204 = vmatprep.subr.bf16.mxu0 %v1318_v3  ;;  %v1211_v56 = vpack.c.bf16 %v621_v55, %v620_v54  ;;  %v721_v54 = vrot.slane %v1438_v18, %v720_v52 }
 0x3c5   :  { %1206 = vmatpush3.bf16.msra.mxu0 %v1205_v8  ;;  %v629_v8 = vrot.slane %v1438_v18, %v628_v29 }
 0x493   :  { %v426_v7 = vpop.f32.mrb[4].mxu0 }
 0x494   :  { %v1111_v10 = vpop.f32.mrb[5].mxu0  ;;  %1121 = vmatmul.mubr.msk.f32.vlgmr.msra.gmra.mrb[2].mxu1 %vm44_vm1, %v426_v7 }
 0x495   :  { %1150 = vmatprep.mubr.msk.f32.mxu1 %vm1319_vm0, %v1320_v6  ;;  %1209 = vmatpush3.bf16.msra.mxu1 %v1208_v53  ;;  %vm738_vm0 = vmor %vm736_vm14, %vm732_vm13  ;;  %v725_v53 = vsub.s32 7, %v1432_v14 }
 0x496   :  { %1210 = vmatprep.subr.bf16.mxu1 %v1318_v3 }
 0x497   :  { %v726_v58 = vrot.slane %v1438_v18, %v725_v53 }
 0x499   :  { %1212 = vmatpush3.bf16.msra.mxu1 %v1211_v56 }
 0x49a   :  { %1213 = vmatprep.subr.bf16.mxu1 %v1318_v3 }
 0x49d   :  { %1215 = vmatpush3.bf16.msra.mxu1 %v1214_v59  ;;  %v804_v59 = vld [vmem:[%s1596_s6] sm:$0xff] }
 0x49e   :  { %1216 = vmatprep.subr.bf16.mxu1 %v1318_v3  ;;  %v729_v3 = vld [vmem:[%s1597_s7 + $0x8] sm:$0xff] }
 0x49f   :  { %v1012_v25 = vadd.s32 4294967266, %v729_v3  ;;  %vm769_vm5 = vcmp.ge.s32.totalorder %v729_v3, 30  ;;  %vm771_vm7 = vcmp.lt.s32.totalorder %v729_v3, 38  ;;  %vm733_vm10 = vcmp.eq.s32.totalorder %v729_v3, 38 }
 0x4a0   :  { %vm773_vm9 = vmand %vm769_vm5, %vm771_vm7  ;;  %vm737_vm15 = vcmp.lt.s32.totalorder %v729_v3, 30  ;;  %vm897_vm5 = vcmask 1046528   ;;  %vm1325_vm7 = vmmov 1  }
 0x4a1   :  { %1218 = vmatpush3.bf16.msra.mxu1 %v1217_v62  ;;  %v1010_v27 = vsel %vm773_vm9, 1.0, %v1320_v6  ;;  %vm739_vm2 = vmor %vm737_vm15, %vm733_vm10 }
 0x4a2   :  { %v1274_v28 = vpack.i.bf16 %v1010_v27, %v1009_v26  ;;  %vm1224_vm8 = vmpackc.low %vm897_vm5, %vm1325_vm7 }
 0x567   :  { %v503_v31 = vpop.f32.mrb[2].mxu1 }
 0x568   :  { %v504_v32 = vadd.f32 %v503_v31, %v433_v30  ;;  %v1122_v33 = vpop.f32.mrb[3].mxu1 }
 0x569   :  { %v735_v33 = vsel %vm733_vm10, 30, %v729_v3 }
 0x56a   :  { %v507_v34 = vadd.f32 %v504_v32, %v1422_v12  ;;  %v525_v12 = vrot.slane %v1438_v18, %v524_v44  ;;  %v1011_v32 = vadd.s32 4294967266, %v728_v23  ;;  %v807_v18 = vld [vmem:[%s1596_s6 + $0x18] sm:$0x7f] }
 0x56c   :  { %v508_v35 = vsel %vm44_vm1, %v507_v34, 0.0 }
 0x56d   :  { %509 = vadd.xlane.f32.xlu0 %v508_v35 }
 0x5fa   :  { %v510_v36 = vpop.xlane.xlu0 %509 }
 0x5fb   :  { %v512_v37 = vmul.f32 0.03125, %v510_v36 }
 0x5fd   :  { %v513_v38 = vsub.f32 %v507_v34, %v512_v37 }
 0x5ff   :  { %v514_v39 = vmul.f32 %v513_v38, %v513_v38 }
 0x601   :  { %v515_v40 = vsel %vm44_vm1, %v514_v39, 0.0 }
 0x602   :  { %516 = vadd.xlane.f32.xlu1 %v515_v40  ;;  %v1542_v40 = vand.u32 127, %v40_v13  ;;  %v734_v13 = vsel %vm732_vm13, 30, %v728_v23 }
 0x613   :  { %784 = vperm.xlu1 %1273, %v1012_v25  }
 0x617   :  { %1275 = vperm.xlu1 %1273, %v1274_v28  }
 0x61b   :  { %748 = vperm.xlu1 %1273, %v735_v33  }
 0x68f   :  { %v517_v41 = vpop.xlane.xlu1 %516 }
 0x690   :  { %v518_v42 = vmul.f32 0.03125, %v517_v41 }
 0x692   :  { %v519_v43 = vadd.f32 1e-05, %v518_v42 }
 0x693   :  { %v785_v34 = vpop.permute.xlu1 %784 }
 0x694   :  { %1288 = vrsqrt.f32 %v519_v43 }
 0x69e   :  { %v1289_v46 = vpop.eup %1288 }
 0x69f   :  { %v521_v47 = vmul.f32 %v1289_v46, %v513_v38  ;;  %v1276_v38 = vpop.permute.xlu1 %1275  ;;  %v1006_v46 = vsel %vm739_vm2, 1.0, %v1320_v6 }
 0x6a0   :  { %v1277_v42 = vunpack.i.l.bf16 %v1276_v38  ;;  %v1278_v61 = vunpack.i.h.bf16 %v1276_v38 }
 0x6a1   :  { %v526_v49 = vmul.f32 %v525_v12, %v521_v47  ;;  %v1005_v12 = vsel %vm738_vm0, 1.0, %v1320_v6 }
 0x6a2   :  { %v1279_v47 = vpack.i.bf16 %v1006_v46, %v1005_v12 }
 0x6a3   :  { %v531_v50 = vadd.f32 %v530_v48, %v526_v49 }
 0x6a5   :  { %1132 = vmatmul.mubr.msk.f32.vlgmr.msra.gmra.mrb[6].mxu0 %vm44_vm1, %v531_v50 }
 0x778   :  { %v605_v1 = vpop.f32.mrb[6].mxu0 }
 0x779   :  { %v606_v2 = vadd.f32 %v605_v1, %v535_v0  ;;  %v1133_v4 = vpop.f32.mrb[7].mxu0  ;;  %v806_v0 = vld [vmem:[%s1596_s6 + $0x10] sm:$0xff]  ;;  %s1326_s6 = smov [#allocation2]  }
 0x77a   :  { %v749_v4 = vpop.permute.xlu1 %748  ;;  %s983_s25 = sshll.u32 %s1326_s6, 4  ;;  %s984_s25 = int_to_ptr.vmem [resolvable:$true] %s983_s25 }
 0x77b   :  { %v610_v5 = vmul.f32 0.044715, %v606_v2  ;;  %v609_v20 = vmul.f32 0.5, %v606_v2  ;;  %vm751_vm9 = vcmp.eq.s32.totalorder %v1542_v40, %v749_v4  ;;  %s1294_s1 = scalar_lea.vmem %s984_s25, 256  ;;  %p1299_p1 = scmp.lt.s32.totalorder %s984_s25, %s984_s25 }
 0x77c   :  { %p1295_p0 = scmp.ne.s32.totalorder %s984_s25, %s1294_s1  ;;  %p1300_p2 = scmp.lt.s32.totalorder %s1294_s1, %s1294_s1 }
 0x77d   :  { %v611_v9 = vmul.f32 %v610_v5, %v606_v2 }
 0x77e   :  { %p1301_p3 = por %p1300_p2, %p1299_p1 }
 0x77f   :  { %v612_v15 = vmul.f32 %v611_v9, %v606_v2 }
 0x780   :  { %p1302_p4 = pnand %p1301_p3, %p1295_p0 }
 0x781   :  { %v613_v16 = vadd.f32 %v612_v15, %v606_v2  ;;  %v1219_v2 = vpack.c.bf16 %v805_v60, %v804_v59  ;;  %v1223_v15 = vpack.c.bf16 %v807_v18, %v806_v0 }
 0x783   :  { %v614_v17 = vmul.f32 0.7978846, %v613_v16 }
 0x785   :  { %1290 = vtanh.f32 %v614_v17 }
 0x78f   :  { %v1291_v19 = vpop.eup %1290 }
 0x790   :  { %v616_v21 = vadd.f32 1.0, %v1291_v19  ;;  %v1008_v19 = vsel %vm751_vm9, 1.0, %v1320_v6 }
 0x792   :  { %v617_v22 = vmul.f32 %v616_v21, %v609_v20 }
 0x794   :  { %1151 = vmatmul.mubr.msk.f32.vlgmr.msra.gmra.mrb[4].mxu1 %vm630_vm3, %v617_v22  ;;  %vm787_vm3 = vcmp.eq.s32.totalorder %v1542_v40, %v785_v34 }
 0x795   :  { %v1014_v14 = vsel %vm787_vm3, 1.0, %v1320_v6 }
 0x796   :  { %v803_v5 = vmul.f32 %v1278_v61, %v1014_v14 }
 0x867   :  { %v700_v7 = vpop.f32.mrb[4].mxu1 }
 0x868   :  { %v701_v10 = vadd.f32 %v700_v7, %v629_v8  ;;  %v1152_v11 = vpop.f32.mrb[5].mxu1 }
 0x86a   :  { %v704_v30 = vadd.f32 %v701_v10, %v531_v50 }
 0x86c   :  { %v705_v31 = vsel %vm44_vm1, %v704_v30, 0.0 }
 0x86d   :  { %706 = vadd.xlane.f32.xlu0 %v705_v31 }
 0x883   :  { %781 = vperm.xlu0 %1272, %v1011_v32  }
 0x8fa   :  { %v707_v35 = vpop.xlane.xlu0 %706 }
 0x8fb   :  { %v708_v36 = vmul.f32 0.03125, %v707_v35 }
 0x8fd   :  { %v709_v37 = vsub.f32 %v704_v30, %v708_v36 }
 0x8ff   :  { %v710_v39 = vmul.f32 %v709_v37, %v709_v37 }
 0x901   :  { %v711_v41 = vsel %vm44_vm1, %v710_v39, 0.0 }
 0x902   :  { %712 = vadd.xlane.f32.xlu0 %v711_v41  ;;  %v782_v43 = vpop.permute.xlu0 %781 }
 0x903   :  { %vm786_vm11 = vcmp.eq.s32.totalorder %v1542_v40, %v782_v43 }
 0x904   :  { %v1013_v44 = vsel %vm786_vm11, 1.0, %v1320_v6 }
 0x905   :  { %v802_v45 = vmul.f32 %v1277_v42, %v1013_v44 }
 0x907   :  { %1155 = vmatprep.mubr.msk.f32.mxu0 %vm808_vm12, %v802_v45 }
 0x918   :  { %745 = vperm.xlu0 %1272, %v734_v13  }
 0x91c   :  { %1280 = vperm.xlu0 %1272, %v1279_v47  }
 0x98f   :  { %v713_v48 = vpop.xlane.xlu0 %712 }
 0x990   :  { %v714_v49 = vmul.f32 0.03125, %v713_v48 }
 0x992   :  { %v715_v50 = vadd.f32 1e-05, %v714_v49 }
 0x994   :  { %1292 = vrsqrt.f32 %v715_v50 }
 0x997   :  { %v746_v51 = vpop.permute.xlu0 %745 }
 0x998   :  { %vm750_vm4 = vcmp.eq.s32.totalorder %v1542_v40, %v746_v51 }
 0x999   :  { %v1007_v9 = vsel %vm750_vm4, 1.0, %v1320_v6 }
 0x99b   :  { %v1281_v56 = vpop.permute.xlu0 %1280 }
 0x99c   :  { %v1282_v63 = vunpack.i.l.bf16 %v1281_v56  ;;  %v1283_v17 = vunpack.i.h.bf16 %v1281_v56 }
 0x99e   :  { %v1293_v55 = vpop.eup %1292  ;;  %v766_v16 = vmul.f32 %v1282_v63, %v1007_v9  ;;  %v767_v20 = vmul.f32 %v1283_v17, %v1008_v19 }
 0x99f   :  { %v717_v57 = vmul.f32 %v1293_v55, %v709_v37 }
 0x9a1   :  { %v722_v62 = vmul.f32 %v721_v54, %v717_v57 }
 0x9a3   :  { %v727_v1 = vadd.f32 %v726_v58, %v722_v62 }
 0x9a5   :  { %1153 = vmatprep.subr.mxu0 %v727_v1 }
 0x9a6   :  { %1154 = vmatpush3.msra.mxu0 %v727_v1 }
 0x9a7   :  { %1156 = vmatmul.mubr.msk.f32.vlgmr.msra.gmra.mrb[8].mxu0 %vm808_vm12, %v803_v5  ;;  %1220 = vmatprep.subr.bf16.mxu0 %v1219_v2 }
 0x9a8   :  { %1222 = vmatpush3.bf16.msra.mxu0 %v1219_v2  ;;  %1166 = vmatprep.mubr.msk.f32.mxu0 %vm890_vm6, %v766_v16 }
 0x9a9   :  { %1225 = vmatprep.subr.msk.bf16.mxu0 %vm1224_vm8, %v1223_v15 }
 0x9ac   :  { %1228 = vmatpush3.bf16.msk.msra.mxu0 %vm1224_vm8, %v1223_v15 }
 0x9af   :  { %1167 = vmatmul.mubr.msk.f32.vlgmr.msra.gmra.mrb[8].mxu0 %vm890_vm6, %v767_v20 }
 0xa82   :  { %v1168_v21 = vpop.f32.mrb[8].mxu0 }
 0xa83   :  { %977 = vst.msk [vmem:[#allocation2 + $0x8] sm:$0xff] %vm44_vm1, %v1168_v21  ;;  %v967_v22 = vpop.f32.mrb[9].mxu0 }
 0xa84   :  { %976 = vst.msk [vmem:[#allocation2] sm:$0xff] %vm44_vm1, %v967_v22 }
 0xa85   :  { %1305 = shalt.err (!%p1302_p4)
}
 0xa86   :  { %s1306_s28 = scalar_lea.hbm %s1598_s8, 256 }
 0xa87   :  { %p1307_p5 = scmp.ne.s32.totalorder %s1598_s8, %s1306_s28  ;;  %p1310_p6 = scmp.lt.u32.totalorder %s1306_s28, %s1598_s8 }
 0xa89   :  { %p1312_p7 = pnand %p1310_p6, %p1307_p5 }
 0xa8b   :  { %1315 = shalt.err (!%p1312_p7)
}
 0xa8c   :  { %s1327_s11 = smov 128   ;;  %s1328_s12 = smov 8  }
 0xa8d   :  { %989 = dma.vmem_to_hbm [thread:$0]  %s984_s25, 256, %s1598_s8, [#allocation3], %s1327_s11, %s1327_s11, %s1328_s12  }
 0xa8e   :  { %1316 = dma.done.wait [#allocation3], 256  }
 0xa8f   :  { %1317 = vsyncadd [#allocation3], 4294967040 }
 0xa90   :  { %993 = vsyncpa [#allocation3], 1 }

</bundles_post_ra>
